<compile_context>
chip_gen: v7x
topology: tpu7x:2x2x1
jax: 0.10.0
libtpu: 0.0.40
codegen_flags: <defaults>
</compile_context>

<pallas_src>
import numpy as np
import jax
import jax.numpy as jnp
from jax.experimental import pallas as pl
from jax.experimental.pallas import tpu as pltpu


_VMEM_LIMIT_BYTES = 32 * 1024 * 1024   # > v5e's 16 MiB default scoped limit, safe on v7x
_KRON_MAX_MN = 1024                    # fused single-matmul (kron) path when M*N <= this
_FUSED_MAX_ELEMS = 512 * 1024          # per-batch VMEM-resident fused path when M*N <= this


def _pick_tile(dim, target, align):
    """Largest multiple of `align` <= target that evenly divides dim, else full dim."""
    if dim <= target:
        return dim
    t = (target // align) * align
    while t >= align:
        if dim % t == 0:
            return t
        t -= align
    return dim


def _idct_cos_matrix(n):
    # C[u, p] = cos(pi * p * (u + 0.5) / n)  -- dense equivalent of precompute_idct_cos.
    u = np.arange(n, dtype=np.float64)[:, None]
    p = np.arange(n, dtype=np.float64)[None, :]
    return np.cos(np.pi * p * (u + 0.5) / n)


# ---------------------------------------------------------------------------
# Generic tiled matmul:  (R, K) @ (K, C) -> (R, C), f32 accumulation.
# ---------------------------------------------------------------------------
def _matmul_kernel(a_ref, b_ref, o_ref, acc_ref):
    @pl.when(pl.program_id(2) == 0)
    def _():
        acc_ref[...] = jnp.zeros_like(acc_ref)

    acc_ref[...] += jnp.dot(a_ref[...], b_ref[...],
                            preferred_element_type=jnp.float32)

    @pl.when(pl.program_id(2) == pl.num_programs(2) - 1)
    def _():
        o_ref[...] = acc_ref[...].astype(o_ref.dtype)


def _tiled_matmul(a, b, out_dtype, *, tm_target=256, tn_target=256, tk_target=512):
    R, K = a.shape
    K2, C = b.shape
    assert K == K2
    tm = _pick_tile(R, tm_target, 8)
    tn = _pick_tile(C, tn_target, 128)
    tk = _pick_tile(K, tk_target, 128)
    grid = (R // tm, C // tn, K // tk)
    in_bytes = np.dtype(a.dtype).itemsize
    out_bytes = np.dtype(out_dtype).itemsize
    return pl.pallas_call(
        _matmul_kernel,
        out_shape=jax.ShapeDtypeStruct((R, C), out_dtype),
        grid_spec=pltpu.PrefetchScalarGridSpec(
            num_scalar_prefetch=0,
            grid=grid,
            in_specs=[
                pl.BlockSpec((tm, tk), lambda i, j, k: (i, k)),
                pl.BlockSpec((tk, tn), lambda i, j, k: (k, j)),
            ],
            out_specs=pl.BlockSpec((tm, tn), lambda i, j, k: (i, j)),
            scratch_shapes=[pltpu.VMEM((tm, tn), jnp.float32)],
        ),
        compiler_params=pltpu.CompilerParams(
            dimension_semantics=("parallel", "parallel", "arbitrary"),
            vmem_limit_bytes=_VMEM_LIMIT_BYTES),
        cost_estimate=pl.CostEstimate(
            flops=2 * R * C * K,
            transcendentals=0,
            bytes_accessed=(R * K + K * C) * in_bytes + R * C * out_bytes),
    )(a, b)


# ---------------------------------------------------------------------------
# Batched row transform:  out[b] = c0 @ tmp[b]   (shared (M, M) lhs).
# ---------------------------------------------------------------------------
def _bmm_left_kernel(c_ref, t_ref, o_ref, acc_ref):
    k = pl.program_id(3)

    @pl.when(k == 0)
    def _():
        acc_ref[...] = jnp.zeros_like(acc_ref)

    acc_ref[...] += jnp.dot(c_ref[...], t_ref[...],
                            preferred_element_type=jnp.float32)

    @pl.when(k == pl.num_programs(3) - 1)
    def _():
        o_ref[...] = acc_ref[...].astype(o_ref.dtype)


def _row_transform(c0, tmp, out_dtype, *, tm_target=256, tn_target=256, tk_target=512):
    B, M, N = tmp.shape
    tm = _pick_tile(M, tm_target, 8)
    tn = _pick_tile(N, tn_target, 128)
    tk = _pick_tile(M, tk_target, 128)
    grid = (B, M // tm, N // tn, M // tk)
    out_bytes = np.dtype(out_dtype).itemsize
    return pl.pallas_call(
        _bmm_left_kernel,
        out_shape=jax.ShapeDtypeStruct((B, M, N), out_dtype),
        grid_spec=pltpu.PrefetchScalarGridSpec(
            num_scalar_prefetch=0,
            grid=grid,
            in_specs=[
                pl.BlockSpec((tm, tk), lambda b, i, j, k: (i, k)),
                pl.BlockSpec((pl.Squeezed(), tk, tn), lambda b, i, j, k: (b, k, j)),
            ],
            out_specs=pl.BlockSpec((pl.Squeezed(), tm, tn),
                                   lambda b, i, j, k: (b, i, j)),
            scratch_shapes=[pltpu.VMEM((tm, tn), jnp.float32)],
        ),
        compiler_params=pltpu.CompilerParams(
            dimension_semantics=("parallel", "parallel", "parallel", "arbitrary"),
            vmem_limit_bytes=_VMEM_LIMIT_BYTES),
        cost_estimate=pl.CostEstimate(
            flops=2 * B * M * M * N,
            transcendentals=0,
            bytes_accessed=(M * M + B * M * N) * 4 + B * M * N * out_bytes),
    )(c0, tmp)


# ---------------------------------------------------------------------------
# Fused per-batch path: both matmuls in one call, intermediate kept in VMEM.
# ---------------------------------------------------------------------------
def _fused_kernel(c0_ref, c1t_ref, x_ref, o_ref, tmp_ref):
    # column transform into VMEM scratch (the buf0 of the original module):
    tmp_ref[...] = jnp.dot(x_ref[...], c1t_ref[...],
                           preferred_element_type=jnp.float32)
    # row transform straight to the output tile:
    o_ref[...] = jnp.dot(c0_ref[...], tmp_ref[...],
                         preferred_element_type=jnp.float32).astype(o_ref.dtype)


def _fused_idcct2(c0, c1t, xb, out_dtype):
    B, M, N = xb.shape
    out_bytes = np.dtype(out_dtype).itemsize
    return pl.pallas_call(
        _fused_kernel,
        out_shape=jax.ShapeDtypeStruct((B, M, N), out_dtype),
        grid_spec=pltpu.PrefetchScalarGridSpec(
            num_scalar_prefetch=0,
            grid=(B,),
            in_specs=[
                pl.BlockSpec((M, M), lambda b: (0, 0)),
                pl.BlockSpec((N, N), lambda b: (0, 0)),
                pl.BlockSpec((pl.Squeezed(), M, N), lambda b: (b, 0, 0)),
            ],
            out_specs=pl.BlockSpec((pl.Squeezed(), M, N), lambda b: (b, 0, 0)),
            scratch_shapes=[pltpu.VMEM((M, N), jnp.float32)],
        ),
        compiler_params=pltpu.CompilerParams(
            dimension_semantics=("parallel",),
            vmem_limit_bytes=_VMEM_LIMIT_BYTES),
        cost_estimate=pl.CostEstimate(
            flops=2 * B * M * N * (M + N),
            transcendentals=0,
            bytes_accessed=(B * M * N + M * M + N * N) * 4 + B * M * N * out_bytes),
    )(c0, c1t, xb)


# ---------------------------------------------------------------------------
# Public entry point.
# ---------------------------------------------------------------------------
def idcct2(x, *, _force_path=None):
    """Pallas IDCCT2: y = idcct(idcct(x)^T)^T over the last two dims of x."""
    orig_shape = x.shape
    M, N = orig_shape[-2], orig_shape[-1]
    B = int(np.prod(orig_shape[:-2])) if len(orig_shape) > 2 else 1
    out_dtype = x.dtype

    # Cosine tables built in f64 on the host, stored/used in f32 regardless of x.dtype.
    c0_np = _idct_cos_matrix(M)        # c0[u, p]
    c1t_np = _idct_cos_matrix(N).T     # c1T[q, v]  (pre-transposed: no in-kernel .T)

    xb = x.reshape((B, M, N)).astype(jnp.float32)

    if _force_path is not None:
        path = _force_path
    elif M * N <= _KRON_MAX_MN:
        path = "kron"
    elif M * N <= _FUSED_MAX_ELEMS:
        path = "fused"
    else:
        path = "two_pass"

    if path == "kron":
        # Tiny-transform path: one lane-dense matmul over the flattened transform.
        #   y_flat[b, u*N+v] = sum_{p,q} x_flat[b, p*N+q] * c0[u,p] * c1[v,q]
        #                    = (x_flat @ kron(c0^T, c1^T))[b, u*N+v]
        kmat = jnp.asarray(np.kron(c0_np.T, c1t_np), dtype=jnp.float32)  # (M*N, M*N)
        x_flat = xb.reshape((B, M * N))
        y_flat = _tiled_matmul(x_flat, kmat, out_dtype,
                               tm_target=512, tn_target=128, tk_target=1024)
        return y_flat.reshape(orig_shape)

    c0 = jnp.asarray(c0_np, dtype=jnp.float32)
    c1t = jnp.asarray(c1t_np, dtype=jnp.float32)

    if path == "fused":
        # Mid-size path: single launch per transform, intermediate stays in VMEM.
        y = _fused_idcct2(c0, c1t, xb, out_dtype)
        return y.reshape(orig_shape)

    # Large-transform path: two streamed tiled matmuls through an HBM intermediate
    # (the functional analogue of buf0/buf1 in the original module); compute-bound
    # at these sizes, so the intermediate round-trip is not the bottleneck.
    # column transform: tmp[b, p, v] = sum_q x[b, p, q] * c1T[q, v]
    tmp = _tiled_matmul(xb.reshape((B * M, N)), c1t, jnp.float32).reshape((B, M, N))
    # row transform:    y[b, u, v] = sum_p c0[u, p] * tmp[b, p, v]
    y = _row_transform(c0, tmp, out_dtype)
    return y.reshape(orig_shape)


# ---------------------------------------------------------------------------
# Reference & test.
# ---------------------------------------------------------------------------
def idcct2_reference(x):
    """float64 numpy reference for validation."""
    x64 = np.asarray(jax.device_get(x), dtype=np.float64)
    M, N = x64.shape[-2], x64.shape[-1]
    c0 = _idct_cos_matrix(M)   # c0[u, p]
    c1 = _idct_cos_matrix(N)   # c1[v, q]
    return np.einsum("...pq,up,vq->...uv", x64, c0, c1, optimize=True)


def _check(y, x, name):
    y64 = np.asarray(jax.device_get(y), dtype=np.float64)
    ref = idcct2_reference(x)
    scale = max(1.0, float(np.max(np.abs(ref))))
    np.testing.assert_allclose(y64 / scale, ref / scale,
                               rtol=1e-4, atol=2e-4, err_msg=name)


if __name__ == "__main__":
    key = jax.random.PRNGKey(0)
    k1, k2, k3 = jax.random.split(key, 3)

    # 1) Small batched transform (2, 4, 16, 16): exercises the fused-kron lane-dense
    #    path; mirrors the x.view([-1, x.size(-1)]) batching of the original module.
    x_small = jax.random.normal(k1, (2, 4, 16, 16), dtype=jnp.float32)
    y_small = jax.block_until_ready(idcct2(x_small))
    _check(y_small, x_small, "small 16x16 batched (kron path)")

    # 2) Moderate single density map (1, 256, 256): exercises the fused single-launch
    #    path with the intermediate held in VMEM.
    x_mid = jax.random.normal(k2, (1, 256, 256), dtype=jnp.float32)
    y_mid = jax.block_until_ready(idcct2(x_mid))
    _check(y_mid, x_mid, "256x256 fused VMEM-intermediate path")

    # 3) Same math forced through the two-pass tiled path (the one real DREAMPlace
    #    density-map sizes 1024..4096 take), at a small shape for fast validation.
    x_tp = jax.random.normal(k3, (2, 256, 128), dtype=jnp.float32)
    y_tp = jax.block_until_ready(idcct2(x_tp, _force_path="two_pass"))
    _check(y_tp, x_tp, "two-pass tiled path (forced)")

    print("KERNEL_OK")
</pallas_src>

<mosaic_0001>
module attributes {stable_mosaic.version = 11 : i64} {
  func.func @_matmul_kernel(%arg0: i32, %arg1: i32, %arg2: i32, %arg3: memref<8x256xf32, #tpu.memory_space<vmem>>, %arg4: memref<256x128xf32, #tpu.memory_space<vmem>>, %arg5: memref<8x128xf32, #tpu.memory_space<vmem>>, %arg6: memref<8x128xf32, #tpu.memory_space<vmem>>) attributes {dimension_semantics = [#tpu.dimension_semantics<parallel>, #tpu.dimension_semantics<parallel>, #tpu.dimension_semantics<arbitrary>], iteration_bounds = array<i64: 1, 2, 1>, scalar_prefetch = 0 : i64, scratch_operands = 1 : i64, tpu.core_type = #tpu.core_type<tc>, window_params = [{transform_indices = @transform_0, window_bounds = array<i64: 8, 256>}, {transform_indices = @transform_1, window_bounds = array<i64: 256, 128>}, {transform_indices = @transform_2, window_bounds = array<i64: 8, 128>}]} {
    %c0_i32 = arith.constant 0 : i32
    %0 = arith.cmpi eq, %arg2, %c0_i32 : i32
    %1 = arith.extui %0 : i1 to i32
    %c0_i32_0 = arith.constant 0 : i32
    %2 = arith.cmpi ne, %1, %c0_i32_0 : i32
    scf.if %2 {
      %cst_10 = arith.constant 0.000000e+00 : f32
      %12 = vector.broadcast %cst_10 : f32 to vector<8x128xf32>
      %c0_11 = arith.constant 0 : index
      %c0_12 = arith.constant 0 : index
      %13 = vector.load %arg6[%c0_11, %c0_12] : memref<8x128xf32, #tpu.memory_space<vmem>>, vector<8x128xf32>
      tpu.vector_store %arg6[%c0_11, %c0_12], %12 {strides = array<i32>} : memref<8x128xf32, #tpu.memory_space<vmem>>, vector<8x128xf32>,
    } else {
    }
    %c0 = arith.constant 0 : index
    %c0_1 = arith.constant 0 : index
    %3 = vector.load %arg6[%c0, %c0_1] : memref<8x128xf32, #tpu.memory_space<vmem>>, vector<8x128xf32>
    %c0_2 = arith.constant 0 : index
    %c0_3 = arith.constant 0 : index
    %4 = vector.load %arg3[%c0_2, %c0_3] : memref<8x256xf32, #tpu.memory_space<vmem>>, vector<8x256xf32>
    %c0_4 = arith.constant 0 : index
    %c0_5 = arith.constant 0 : index
    %5 = vector.load %arg4[%c0_4, %c0_5] : memref<256x128xf32, #tpu.memory_space<vmem>>, vector<256x128xf32>
    %cst = arith.constant dense<0.000000e+00> : vector<8x128xf32>
    %6 = tpu.matmul %4, %5, %cst {dimension_numbers = #tpu.dot_dimension_numbers<[1], [0], [0], [1], [0, 0, 1, 1], [], []>} : vector<8x256xf32>, vector<256x128xf32>, vector<8x128xf32> -> vector<8x128xf32>
    %7 = arith.addf %3, %6 : vector<8x128xf32>
    %c0_6 = arith.constant 0 : index
    %c0_7 = arith.constant 0 : index
    %8 = vector.load %arg6[%c0_6, %c0_7] : memref<8x128xf32, #tpu.memory_space<vmem>>, vector<8x128xf32>
    tpu.vector_store %arg6[%c0_6, %c0_7], %7 {strides = array<i32>} : memref<8x128xf32, #tpu.memory_space<vmem>>, vector<8x128xf32>,
    %c0_i32_8 = arith.constant 0 : i32
    %9 = arith.cmpi eq, %arg2, %c0_i32_8 : i32
    %10 = arith.extui %9 : i1 to i32
    %c0_i32_9 = arith.constant 0 : i32
    %11 = arith.cmpi ne, %10, %c0_i32_9 : i32
    scf.if %11 {
      %c0_10 = arith.constant 0 : index
      %c0_11 = arith.constant 0 : index
      %12 = vector.load %arg6[%c0_10, %c0_11] : memref<8x128xf32, #tpu.memory_space<vmem>>, vector<8x128xf32>
      %c0_12 = arith.constant 0 : index
      %c0_13 = arith.constant 0 : index
      %13 = vector.load %arg5[%c0_12, %c0_13] : memref<8x128xf32, #tpu.memory_space<vmem>>, vector<8x128xf32>
      tpu.vector_store %arg5[%c0_12, %c0_13], %12 {strides = array<i32>} : memref<8x128xf32, #tpu.memory_space<vmem>>, vector<8x128xf32>,
    } else {
    }
    return
  }
  func.func @transform_0(%arg0: i32, %arg1: i32, %arg2: i32) -> (i32, i32) {
    %c0_i32 = arith.constant 0 : i32
    return %arg0, %arg2 : i32, i32
  }
  func.func @transform_1(%arg0: i32, %arg1: i32, %arg2: i32) -> (i32, i32) {
    %c0_i32 = arith.constant 0 : i32
    return %arg2, %arg1 : i32, i32
  }
  func.func @transform_2(%arg0: i32, %arg1: i32, %arg2: i32) -> (i32, i32) {
    %c0_i32 = arith.constant 0 : i32
    return %arg0, %arg1 : i32, i32
  }
}

</mosaic_0001>

<bundles_post_ra>
// kernel: tpu_custom_call.1
= control target key start
LH: loop header
LB: loop body
LE: loop exit
PB: predicated region body
PF: predicated region fallthrough
CT: control target
= control target key end

     0   :  { %7 = vsyncpa [#allocation4], 0  ;;  %s1028_s0 = inlined_call_operand.hbm [shape: f32[8,256], index: 0, kind: input, shape index: {}]   ;;  %s1029_s1 = inlined_call_operand.hbm [shape: f32[256,256], index: 1, kind: input, shape index: {}]   ;;  %s1030_s2 = inlined_call_operand.hbm [shape: f32[8,256], index: 2, kind: output, shape index: {}]  }
   0x1   :  { %8 = vsyncpa [#allocation7], 0 }
   0x2   :  { %10 = vsyncpa [#allocation7 + $0x1], 0 }
   0x3   :  { %11 = vsyncpa [#allocation5], 0 }
   0x4   :  { %13 = vsyncpa [#allocation5 + $0x1], 0  ;;  %s774_s9 = smov 0   ;;  %s776_s10 = smov 0  }
   0x5   :  { %s778_s11 = smov 0   ;;  %s780_s12 = smov 0  }
   0x6   :  { %s782_s13 = smov 0   ;;  %s784_s14 = smov 0  }
   0x7 LB: > { %s449_s15 = sadd.s32 4294967295, %s751_s14   ;;  %s450_s16 = sadd.s32 4294967294, %s751_s14   ;;  %s751_s14 = sphi %s784_s14, %s19_s14   ;;  %s747_s13 = sphi %s782_s13, %s1058_s13   ;;  %s743_s12 = sphi %s780_s12, %s1057_s12   ;;  %s739_s11 = sphi %s778_s11, %s1056_s11   ;;  %s735_s10 = sphi %s776_s10, %s1055_s10   ;;  %s731_s9 = sphi %s774_s9, %s1054_s9  }
   0x8   : > { %s75_s17 = sadd.s32 1, %s739_s11  ;;  %p82_p0 = scmp.ne.s32.totalorder %s739_s11, %s735_s10 }
   0x9   : > { %p83_p1 = scmp.eq.s32.totalorder %s751_s14, 0  ;;  %p88_p2 = scmp.ne.s32.totalorder %s735_s10, %s731_s9 }
   0xa   : > { %p812_p3 = scmp.eq.s32.totalorder %s449_s15, 0  ;;  %p114_p4 = scmp.eq.s32.totalorder %s449_s15, 1 }
   0xb   : > { %p816_p5 = por %p83_p1, %p82_p0  ;;  %p120_p6 = scmp.eq.s32.totalorder %s450_s16, 1 }
   0xc   : > { %s1037_s18 = scalar_select %p812_p3, 1, 0 }
   0xd   : > { %p822_p7 = por %p812_p3, %p88_p2  ;;  %p826_p8 = por %p114_p4, %p82_p0 }
   0xe   : > { %p830_p9 = por %p120_p6, %p88_p2  ;;  %p451_p10 = scmp.ge.s32.totalorder %s751_s14, 1 }
   0xf   : > { %s1039_s20 = scalar_select %p822_p7, 1, 0 }
  0x10   : > { %s1040_s21 = scalar_select %p826_p8, 1, 0 }
  0x11   : > { %s1041_s22 = scalar_select %p830_p9, 1, 0 }
  0x12   : > { %p127_p11 = scmp.lt.s32.totalorder %s751_s14, 3  ;;  %s753_s24 = smov [#allocation3]  }
  0x13   : > { %s145_s25 = sshll.u32 %s753_s24, 4  ;;  %p552_p1 = scmp.lt.s32.totalorder %s751_s14, 2  ;;  %s146_s25 = int_to_ptr.vmem [resolvable:$true] %s145_s25 }
  0x14   : > { %p837_p13 = pnand %p451_p10, %p127_p11  ;;  %s34_s28 = sadd.s32 1, %s747_s13 }
  0x15   : > { %p846_p4 = pnand %p552_p1, %p816_p5  ;;  %p857_p6 = scmp.ge.s32.totalorder %s34_s28, 2 }
  0x16   : > { %s1042_s23 = scalar_select %p837_p13, 1, 0 }
  0x17   : > { %p539_p0 = pneg %p837_p13  ;;  %s156_s30 = sand.u32 1, %s739_s11  }
  0x18   : > { %s1043_s26 = scalar_select %p846_p4, 1, 0 }
  0x19   : > { %p852_p2 = pnand %p539_p0, %p812_p3  ;;  %s607_s5 = scalar_lea.hbm %s1028_s0, 256 }
  0x1a   : > { %s1045_s29 = scalar_select %p857_p6, 1, 0 }
  0x1b   : > { %p608_p5 = scmp.ne.s32.totalorder %s1028_s0, %s607_s5  ;;  %p609_p10 = pneg %p852_p2 }
  0x1c   : > { %p614_p0 = scmp.lt.u32.totalorder %s607_s5, %s1028_s0 }
  0x1d   : > { %p610_p11 = pnand %p609_p10, %p608_p5 }
  0x1f   : > { %p611_p1 = pneg %p610_p11 }
  0x21   : > { %p616_p12 = pnand %p614_p0, %p611_p1 }
  0x23   : > { %619 = shalt.err (!%p616_p12)
}
  0x24   : > { %s620_s16 = scalar_lea.vmem %s146_s25, 256  ;;  %p628_p3 = scmp.lt.s32.totalorder %s146_s25, %s146_s25 }
  0x25   : > { %p621_p9 = scmp.ne.s32.totalorder %s146_s25, %s620_s16  ;;  %p629_p13 = scmp.lt.s32.totalorder %s620_s16, %s620_s16 }
  0x27   : > { %p623_p8 = pnand %p621_p9, %p609_p10  ;;  %p630_p4 = por %p629_p13, %p628_p3 }
  0x29   : > { %p624_p7 = pneg %p623_p8 }
  0x2b   : > { %p631_p6 = pnand %p630_p4, %p624_p7 }
  0x2d   : > { %634 = shalt.err (!%p631_p6)
}
  0x2e   : > { %542 = dma.hbm_to_vmem [thread:$0]  (!%p852_p2), %s1028_s0, 256, %s146_s25, [#allocation4]  }
  0x2f   : > { %p1046_p9 = scmp.ne.s32.totalorder %s1045_s29, 0  ;;  %s454_s3 = sshll.u32 %s156_s30, 8 }
  0x30   : > { %s455_s5 = sshll.u32 %s747_s13, 7  ;;  %s160_s8 = scalar_lea.vmem [#allocation6], %s454_s3 }
  0x31   : > { %s1060_s28 = smov (%p1046_p9, %s34_s28), 0  ;;  %s888_s7 = scalar_lea.hbm %s1029_s1, %s455_s5 }
  0x32   : > { %s71_s4 = ssub.s32 %s747_s13, %s1060_s28  ;;  %s169_s15 = sshll.u32 %s160_s8, 4  ;;  %s895_s15 = int_to_ptr.vmem [resolvable:$true] %s169_s15 }
  0x33   : > { %p73_p3 = scmp.eq.s32.totalorder %s71_s4, 0  ;;  %s897_s29 = scalar_lea.sflag [#allocation7], %s156_s30 }
  0x34   : > { %s635_s16 = scalar_lea.hbm %s888_s7, 4096  ;;  %p1047_p8 = scmp.ne.s32.totalorder %s1043_s26, 0 }
  0x35   : > { %s893_s25 = scalar_select %p73_p3, %s739_s11, %s75_s17  }
  0x36   : > { %p636_p7 = scmp.ne.s32.totalorder %s888_s7, %s635_s16  ;;  %p637_p12 = pneg %p1047_p8 }
  0x37   : > { %s640_s3 = scalar_lea.hbm %s1029_s1, 8192  ;;  %p641_p2 = scmp.lt.u32.totalorder %s888_s7, %s1029_s1 }
  0x38   : > { %p638_p13 = pnand %p637_p12, %p636_p7  ;;  %p642_p6 = scmp.lt.u32.totalorder %s640_s3, %s635_s16 }
  0x39   : > { %p644_p10 = scmp.lt.u32.totalorder %s635_s16, %s888_s7 }
  0x3a   : > { %p639_p4 = pneg %p638_p13  ;;  %p643_p5 = por %p642_p6, %p641_p2 }
  0x3c   : > { %p645_p11 = por %p644_p10, %p643_p5 }
  0x3e   : > { %p646_p1 = pnand %p645_p11, %p639_p4 }
  0x40   : > { %649 = shalt.err (!%p646_p1)
}
  0x41   : > { %s650_s17 = scalar_lea.vmem %s895_s15, 4096  ;;  %s754_s30 = smov [#allocation6]  }
  0x42   : > { %p651_p0 = scmp.ne.s32.totalorder %s895_s15, %s650_s17  ;;  %s655_s27 = sshll.u32 %s754_s30, 4  ;;  %s656_s27 = int_to_ptr.vmem [resolvable:$false] %s655_s27 }
  0x43   : > { %s657_s6 = scalar_lea.vmem %s656_s27, 8192  ;;  %p658_p7 = scmp.lt.s32.totalorder %s895_s15, %s656_s27 }
  0x44   : > { %p653_p9 = pnand %p651_p0, %p637_p12  ;;  %p659_p13 = scmp.lt.s32.totalorder %s657_s6, %s650_s17 }
  0x46   : > { %p654_p3 = pneg %p653_p9  ;;  %p660_p2 = por %p659_p13, %p658_p7 }
  0x48   : > { %p661_p6 = pnand %p660_p2, %p654_p3 }
  0x4a   : > { %664 = shalt.err (!%p661_p6)
}
  0x4b   : > { %s755_s8 = smov 256   ;;  %s756_s16 = smov 128  }
  0x4c   : > { %s757_s19 = smov 8   ;;  %p1048_p12 = scmp.ne.s32.totalorder %s1042_s23, 0 }
  0x4d   : > { %546 = dma.hbm_to_vmem [thread:$0]  (!%p1047_p8), %s888_s7, 4096, %s895_s15, %s897_s29, %s755_s8, %s756_s16, %s757_s19  }
  0x4e   : > { %181 = sbr.rel (%p1048_p12) target bundleno = 354 (0x162), region = 28  ;;  %p1049_p4 = scmp.ne.s32.totalorder (!%p1048_p12), %s1037_s18, 0 }
  0x55   : > { %718 = dma.done.wait (%p1049_p4), [#allocation4], 256  }
  0x56   : > { %720 = vsyncadd (%p1049_p4), [#allocation4], 4294967040  ;;  %s932_s24 = sand.u32 1, %s735_s10   ;;  %p1050_p8 = scmp.ne.s32.totalorder %s1039_s20, 0 }
  0x57   : > { %s458_s3 = sshll.u32 %s932_s24, 8  ;;  %s188_s4 = scalar_lea.sflag [#allocation7], %s932_s24 }
  0x58   : > { %s936_s5 = scalar_lea.vmem [#allocation6], %s458_s3 }
  0x59   : > { %722 = dma.done.wait (%p1050_p8), %s188_s4, 4096  }
  0x5a   : > { %724 = vsyncadd (%p1050_p8), %s188_s4, 4294963200  ;;  %v238_v0 = vld [vmem:[%s936_s5 + $0x80] sm:$0xff]  ;;  %v239_v1 = vld [vmem:[%s936_s5 + $0x88] sm:$0xff]  ;;  %s459_s18 = sshll.u32 %s932_s24, 3  ;;  %s461_s20 = sshll.u32 %s743_s12, 7 }
  0x5b   : > { %v222_v2 = vld [vmem:[%s936_s5] sm:$0xff]  ;;  %v499_v3 = vpack.c.bf16 %v239_v1, %v238_v0  ;;  %v223_v4 = vld [vmem:[%s936_s5 + $0x8] sm:$0xff]  ;;  %v240_v5 = vld [vmem:[%s936_s5 + $0x90] sm:$0xff]  ;;  %s211_s23 = scalar_lea.vmem [#allocation8], %s459_s18  ;;  %s979_s29 = scalar_lea.hbm %s1030_s2, %s461_s20 }
  0x5c   : > { %v241_v6 = vld [vmem:[%s936_s5 + $0x98] sm:$0xff]  ;;  %v501_v7 = vpack.c.bf16 %v223_v4, %v222_v2  ;;  %v224_v9 = vld [vmem:[%s936_s5 + $0x10] sm:$0xff]  ;;  %v242_v11 = vld [vmem:[%s936_s5 + $0xa0] sm:$0xff]  ;;  %s347_s26 = sshll.u32 %s211_s23, 4  ;;  %s332_s17 = scalar_lea.sflag [#allocation5], %s932_s24  ;;  %s981_s26 = int_to_ptr.vmem [resolvable:$true] %s347_s26 }
  0x5d   : > { %v503_v8 = vpack.c.bf16 %v241_v6, %v240_v5  ;;  %v225_v10 = vld [vmem:[%s936_s5 + $0x18] sm:$0xff]  ;;  %500 = vmatprep.subr.bf16.mxu0 %v499_v3  ;;  %v243_v12 = vld [vmem:[%s936_s5 + $0xa8] sm:$0xff]  ;;  %v226_v15 = vld [vmem:[%s936_s5 + $0x20] sm:$0xff]  ;;  %s665_s30 = scalar_lea.vmem %s981_s26, 128  ;;  %p1051_p10 = scmp.ne.s32.totalorder %s1040_s21, 0 }
  0x5e   : > { %502 = vmatpush3.bf16.msra.mxu0 %v501_v7  ;;  %v505_v13 = vpack.c.bf16 %v225_v10, %v224_v9  ;;  %v507_v14 = vpack.c.bf16 %v243_v12, %v242_v11  ;;  %v227_v16 = vld [vmem:[%s936_s5 + $0x28] sm:$0xff]  ;;  %v244_v17 = vld [vmem:[%s936_s5 + $0xb0] sm:$0xff]  ;;  %v245_v18 = vld [vmem:[%s936_s5 + $0xb8] sm:$0xff]  ;;  %p666_p5 = scmp.ne.s32.totalorder %s981_s26, %s665_s30  ;;  %s758_s12 = smov [#allocation8]  }
  0x5f   : > { %504 = vmatprep.subr.bf16.mxu0 %v503_v8  ;;  %v509_v19 = vpack.c.bf16 %v227_v16, %v226_v15  ;;  %v511_v20 = vpack.c.bf16 %v245_v18, %v244_v17  ;;  %v228_v21 = vld [vmem:[%s936_s5 + $0x30] sm:$0xff]  ;;  %v229_v22 = vld [vmem:[%s936_s5 + $0x38] sm:$0xff]  ;;  %v246_v23 = vld [vmem:[%s936_s5 + $0xc0] sm:$0xff]  ;;  %s669_s27 = sshll.u32 %s758_s12, 4  ;;  %s670_s27 = int_to_ptr.vmem [resolvable:$false] %s669_s27 }
  0x60   : > { %v247_v24 = vld [vmem:[%s936_s5 + $0xc8] sm:$0xff]  ;;  %v221_v25 = vld [vmem:[#allocation3 + $0x8] sm:$0xff]  ;;  %v513_v26 = vpack.c.bf16 %v229_v22, %v228_v21  ;;  %v230_v28 = vld [vmem:[%s936_s5 + $0x40] sm:$0xff]  ;;  %p667_p11 = pnand %p666_p5, %p1051_p10  ;;  %s671_s6 = scalar_lea.vmem %s670_s27, 256 }
  0x61   : > { %318 = vmatprep.mubr.f32.mxu0 %v221_v25  ;;  %v515_v27 = vpack.c.bf16 %v247_v24, %v246_v23  ;;  %v231_v29 = vld [vmem:[%s936_s5 + $0x48] sm:$0xff]  ;;  %v248_v30 = vld [vmem:[%s936_s5 + $0xd0] sm:$0xff]  ;;  %v249_v31 = vld [vmem:[%s936_s5 + $0xd8] sm:$0xff]  ;;  %p672_p0 = scmp.lt.s32.totalorder %s981_s26, %s670_s27  ;;  %p673_p9 = scmp.lt.s32.totalorder %s671_s6, %s665_s30 }
  0x62   : > { %506 = vmatpush3.bf16.msra.mxu0 %v505_v13  ;;  %v517_v32 = vpack.c.bf16 %v231_v29, %v230_v28  ;;  %v519_v33 = vpack.c.bf16 %v249_v31, %v248_v30  ;;  %v232_v34 = vld [vmem:[%s936_s5 + $0x50] sm:$0xff]  ;;  %v233_v35 = vld [vmem:[%s936_s5 + $0x58] sm:$0xff]  ;;  %v250_v36 = vld [vmem:[%s936_s5 + $0xe0] sm:$0xff]  ;;  %p668_p1 = pneg %p667_p11 }
  0x63   : > { %508 = vmatprep.subr.bf16.mxu0 %v507_v14  ;;  %v251_v37 = vld [vmem:[%s936_s5 + $0xe8] sm:$0xff]  ;;  %v521_v38 = vpack.c.bf16 %v233_v35, %v232_v34  ;;  %v234_v40 = vld [vmem:[%s936_s5 + $0x60] sm:$0xff]  ;;  %v252_v42 = vld [vmem:[%s936_s5 + $0xf0] sm:$0xff]  ;;  %p674_p3 = por %p673_p9, %p672_p0 }
  0x64   : > { %v523_v39 = vpack.c.bf16 %v251_v37, %v250_v36  ;;  %v235_v41 = vld [vmem:[%s936_s5 + $0x68] sm:$0xff]  ;;  %v253_v43 = vld [vmem:[%s936_s5 + $0xf8] sm:$0xff]  ;;  %v236_v46 = vld [vmem:[%s936_s5 + $0x70] sm:$0xff] }
  0x65   : > { %v525_v44 = vpack.c.bf16 %v235_v41, %v234_v40  ;;  %v527_v45 = vpack.c.bf16 %v253_v43, %v252_v42  ;;  %v237_v47 = vld [vmem:[%s936_s5 + $0x78] sm:$0xff]  ;;  %v220_v49 = vld [vmem:[#allocation3] sm:$0xff]  ;;  %p675_p7 = pnand %p674_p3, %p668_p1 }
  0x66   : > { %510 = vmatpush3.bf16.msra.mxu0 %v509_v19  ;;  %v529_v48 = vpack.c.bf16 %v237_v47, %v236_v46 }
  0x67   : > { %512 = vmatprep.subr.bf16.mxu0 %v511_v20 }
  0x6a   : > { %514 = vmatpush3.bf16.msra.mxu0 %v513_v26 }
  0x6b   : > { %516 = vmatprep.subr.bf16.mxu0 %v515_v27 }
  0x6e   : > { %518 = vmatpush3.bf16.msra.mxu0 %v517_v32 }
  0x6f   : > { %520 = vmatprep.subr.bf16.mxu0 %v519_v33 }
  0x72   : > { %522 = vmatpush3.bf16.msra.mxu0 %v521_v38 }
  0x73   : > { %524 = vmatprep.subr.bf16.mxu0 %v523_v39 }
  0x76   : > { %526 = vmatpush3.bf16.msra.mxu0 %v525_v44 }
  0x77   : > { %528 = vmatprep.subr.bf16.mxu0 %v527_v45 }
  0x7a   : > { %530 = vmatpush3.bf16.msra.mxu0 %v529_v48 }
  0x7d   : > { %319 = vmatmul.mubr.f32.vlgmr.msra.gmra.mrb[0].mxu0 %v220_v49 }
 0x150   : > { %v496_v50 = vpop.f32.mrb[0].mxu0 }
 0x151   : > { %v497_v51 = vpop.f32.mrb[1].mxu0 }
 0x152   : > { %v498_v52 = vadd.f32 %v497_v51, %v496_v50 }
 0x154   : > { %330 = vst [vmem:[%s211_s23] sm:$0xff] %v498_v52 }
 0x155   : > { %678 = shalt.err (!%p675_p7)
}
 0x156   : > { %s679_s8 = scalar_lea.hbm %s979_s29, 128  ;;  %s683_s24 = scalar_lea.hbm %s1030_s2, 256 }
 0x157   : > { %p680_p13 = scmp.ne.s32.totalorder %s979_s29, %s679_s8  ;;  %p684_p12 = scmp.lt.u32.totalorder %s979_s29, %s1030_s2 }
 0x158   : > { %p685_p4 = scmp.lt.u32.totalorder %s683_s24, %s679_s8  ;;  %p687_p5 = scmp.lt.u32.totalorder %s679_s8, %s979_s29 }
 0x159   : > { %p681_p2 = pnand %p680_p13, %p1051_p10 }
 0x15a   : > { %p686_p8 = por %p685_p4, %p684_p12 }
 0x15b   : > { %p682_p6 = pneg %p681_p2 }
 0x15c   : > { %p688_p11 = por %p687_p5, %p686_p8 }
 0x15e   : > { %p689_p1 = pnand %p688_p11, %p682_p6 }
 0x160   : > { %692 = shalt.err (!%p689_p1)
}
 0x161   : > { %537 = dma.vmem_to_hbm [thread:$0]  (%p1051_p10), %s981_s26, 128, %s979_s29, %s332_s17  }
 0x162 PF: > { %s359_s5 = sand.u32 1, %s731_s9   ;;  %p1052_p0 = scmp.ne.s32.totalorder %s1041_s22, 0 }
 0x163   : > { %p1053_p9 = scmp.ge.s32.totalorder %s751_s14, 2  ;;  %s360_s18 = scalar_lea.sflag [#allocation5], %s359_s5 }
 0x165   : > { %p548_p3 = pnand %p1053_p9, %p1052_p0 }
 0x167   : > { %726 = dma.done.wait (!%p548_p3), %s360_s18, 128  }
 0x168   : > { %728 = vsyncadd (!%p548_p3), %s360_s18, 4294967168  ;;  %s19_s14 = sadd.s32 1, %s751_s14   ;;  %s1054_s9 = smov %s735_s10 }
 0x169   : > { %p16_p7 = scmp.ge.s32.totalorder %s19_s14, 4   ;;  %s1055_s10 = smov %s739_s11 }
 0x16a   : > { %s1056_s11 = smov %s893_s25  ;;  %s1057_s12 = smov %s747_s13 }
 0x16b   : > { %s1058_s13 = smov %s1060_s28  ;;  %18 = sbr.rel (!%p16_p7) target bundleno = 7 (0x7), region = 87 }
 0x172   :  { %365 = vsyncpa [#allocation4], 1 }
 0x173   :  { %367 = vsyncpa [#allocation4 + $0x1], 1 }
 0x174   :  { %368 = vsyncpa [#allocation7], 1 }
 0x175   :  { %370 = vsyncpa [#allocation7 + $0x1], 1 }
 0x176   :  { %371 = vsyncpa [#allocation5], 1 }
 0x177   :  { %373 = vsyncpa [#allocation5 + $0x1], 1 }

</bundles_post_ra>
